<compile_context>
chip_gen: v6e
topology: v6e:2x2x1
jax: 0.10.0
libtpu: 0.0.40
codegen_flags: <defaults>
</compile_context>

<pallas_src>
import math
import jax
import jax.numpy as jnp
from jax import lax
from jax.experimental import pallas as pl
from jax.experimental.pallas import tpu as pltpu


def _gelu_exact(x):
    # torch.nn.functional.gelu default: exact erf-based GELU
    return 0.5 * x * (1.0 + lax.erf(x * (1.0 / math.sqrt(2.0))))


def mae_recon_head_kernel(x_ref, w1_ref, wexp_ref, b1e_ref, w2_ref, b2_ref, o_ref):
    # x_ref:    (B*T, F)      input, batch fused along sublanes
    # w1_ref:   (F, H)        first recon linear (transposed for x @ W)
    # wexp_ref: (B*M, B*T)    block-diagonal token-expansion weight kron(I_B, Wexp)
    # b1e_ref:  (B*M, H)      folded bias: bexp[m]*colsum(W1)[h] + b1[h], tiled over B
    # w2_ref:   (H, Cp)       second recon linear, output channels zero-padded to Cp (lane-dense)
    # b2_ref:   (1, Cp)       second bias, zero-padded
    # o_ref:    (B*M, Cp)     padded output
    # Reassociated order: contract features first, then expand tokens.
    z = jnp.dot(x_ref[...], w1_ref[...], preferred_element_type=jnp.float32)          # (B*T, H)
    h = jnp.dot(wexp_ref[...], z, preferred_element_type=jnp.float32) + b1e_ref[...]  # (B*M, H)
    h = _gelu_exact(h)
    out = jnp.dot(h, w2_ref[...], preferred_element_type=jnp.float32) + b2_ref[...]   # (B*M, Cp)
    o_ref[...] = out.astype(o_ref.dtype)


def mae_branch_recon_linear_head(x, wexp, bexp, w1, b1, w2, b2):
    """x: (B, T, F) -> (B, M, C) where M = wexp.shape[0], C = w2.shape[1].

    wexp: (M, T), bexp: (M,), w1: (F, H), b1: (H,), w2: (H, C), b2: (C,).
    """
    B, T, F = x.shape
    M = wexp.shape[0]
    H = w1.shape[1]
    C = w2.shape[1]

    # Lane-dense padded channel count (multiple of 128) for unmasked full-vreg stores.
    Cp = ((C + 127) // 128) * 128

    # --- wrapper-side (cheap, one-time) preprocessing -----------------------
    x2 = x.reshape(B * T, F)                                         # rows ordered (b, t)
    wexp_bd = jnp.kron(jnp.eye(B, dtype=wexp.dtype), wexp)           # (B*M, B*T), rows ordered (b, m)
    colsum_w1 = jnp.sum(w1, axis=0)                                  # (H,)
    b1_eff = jnp.tile(bexp[:, None] * colsum_w1[None, :] + b1[None, :], (B, 1))  # (B*M, H)
    w2_pad = jnp.pad(w2, ((0, 0), (0, Cp - C)))                      # (H, Cp)
    b2_pad = jnp.pad(b2.reshape(1, C), ((0, 0), (0, Cp - C)))        # (1, Cp)

    out_pad = pl.pallas_call(
        mae_recon_head_kernel,
        out_shape=jax.ShapeDtypeStruct((B * M, Cp), x.dtype),
        grid_spec=pltpu.PrefetchScalarGridSpec(
            num_scalar_prefetch=0,
            grid=(1,),  # single step: whole problem resident in VMEM (KB-scale)
            in_specs=[
                pl.BlockSpec((B * T, F), lambda i: (0, 0)),      # x (batch-fused)
                pl.BlockSpec((F, H), lambda i: (0, 0)),          # W1
                pl.BlockSpec((B * M, B * T), lambda i: (0, 0)),  # block-diag Wexp
                pl.BlockSpec((B * M, H), lambda i: (0, 0)),      # folded bias
                pl.BlockSpec((H, Cp), lambda i: (0, 0)),         # W2 (lane-padded)
                pl.BlockSpec((1, Cp), lambda i: (0, 0)),         # b2 (lane-padded)
            ],
            out_specs=pl.BlockSpec((B * M, Cp), lambda i: (0, 0)),
        ),
        compiler_params=pltpu.CompilerParams(
            dimension_semantics=("arbitrary",)),
    )(x2, w1, wexp_bd, b1_eff, w2_pad, b2_pad)

    # Slice padded channels away and split the fused (b, m) row axis.
    return out_pad[:, :C].reshape(B, M, C)


def _reference(x, wexp, bexp, w1, b1, w2, b2):
    # Pure-JAX reference in the ORIGINAL (non-reassociated) op order.
    y = jnp.einsum("btf,mt->bmf", x, wexp) + bexp[None, :, None]
    h = _gelu_exact(jnp.einsum("bmf,fh->bmh", y, w1) + b1[None, None, :])
    return jnp.einsum("bmh,hc->bmc", h, w2) + b2[None, None, :]


if __name__ == "__main__":
    # Small shapes consistent with the module
    B = 2
    n_tokens = 8
    n_points_per_token = 4
    n_features = 32
    output_dimension = 4
    M = n_tokens * n_points_per_token           # 32
    H = n_features // 2                         # 16

    key = jax.random.PRNGKey(0)
    kx, k0, k1, k2, k3, k4, k5 = jax.random.split(key, 7)

    dtype = jnp.float32
    x = jax.random.normal(kx, (B, n_tokens, n_features), dtype=dtype)

    # Deterministic parameter init (uniform like nn.Linear's kaiming-uniform range).
    def init_linear(kw, kb, fan_in, fan_out):
        bound = 1.0 / math.sqrt(fan_in)
        w = jax.random.uniform(kw, (fan_out, fan_in), dtype, -bound, bound)
        b = jax.random.uniform(kb, (fan_out,), dtype, -bound, bound)
        return w, b

    # Linear_Interpolated_Expansion: Linear(n_tokens -> M) applied along token axis
    wexp, bexp = init_linear(k0, k1, n_tokens, M)               # (M, T), (M,)
    # recon_head[0]: Linear(F -> F//2)
    w1_t, b1 = init_linear(k2, k3, n_features, H)               # (H, F), (H,)
    # recon_head[2]: Linear(F//2 -> C)
    w2_t, b2 = init_linear(k4, k5, H, output_dimension)         # (C, H), (C,)

    # Pre-transpose so the kernel does x @ W (lane dim = output features).
    w1 = w1_t.T     # (F, H)
    w2 = w2_t.T     # (H, C)

    out = mae_branch_recon_linear_head(x, wexp, bexp, w1, b1, w2, b2)
    out = jax.block_until_ready(out)

    ref = _reference(x, wexp, bexp, w1, b1, w2, b2)
    assert out.shape == (B, M, output_dimension), out.shape
    # Slightly looser tolerance: the kernel uses a reassociated (algebraically
    # equivalent) op order, so f32 rounding differs marginally from the reference.
    assert jnp.allclose(out, ref, atol=1e-4, rtol=1e-4), \
        float(jnp.max(jnp.abs(out - ref)))

    print("KERNEL_OK")
</pallas_src>

<mosaic_0001>
module attributes {stable_mosaic.version = 11 : i64} {
  func.func @mae_recon_head_kernel(%arg0: i32, %arg1: memref<16x32xf32, #tpu.memory_space<vmem>>, %arg2: memref<32x16xf32, #tpu.memory_space<vmem>>, %arg3: memref<64x16xf32, #tpu.memory_space<vmem>>, %arg4: memref<64x16xf32, #tpu.memory_space<vmem>>, %arg5: memref<16x128xf32, #tpu.memory_space<vmem>>, %arg6: memref<1x128xf32, #tpu.memory_space<vmem>>, %arg7: memref<64x128xf32, #tpu.memory_space<vmem>>) attributes {dimension_semantics = [#tpu.dimension_semantics<arbitrary>], iteration_bounds = array<i64: 1>, scalar_prefetch = 0 : i64, scratch_operands = 0 : i64, tpu.core_type = #tpu.core_type<tc>, window_params = [{pipeline_mode = #tpu.pipeline_mode<synchronous>, transform_indices = @transform_0, window_bounds = array<i64: 16, 32>}, {pipeline_mode = #tpu.pipeline_mode<synchronous>, transform_indices = @transform_1, window_bounds = array<i64: 32, 16>}, {pipeline_mode = #tpu.pipeline_mode<synchronous>, transform_indices = @transform_2, window_bounds = array<i64: 64, 16>}, {pipeline_mode = #tpu.pipeline_mode<synchronous>, transform_indices = @transform_3, window_bounds = array<i64: 64, 16>}, {pipeline_mode = #tpu.pipeline_mode<synchronous>, transform_indices = @transform_4, window_bounds = array<i64: 16, 128>}, {pipeline_mode = #tpu.pipeline_mode<synchronous>, transform_indices = @transform_5, window_bounds = array<i64: 1, 128>}, {pipeline_mode = #tpu.pipeline_mode<synchronous>, transform_indices = @transform_6, window_bounds = array<i64: 64, 128>}]} {
    %c0 = arith.constant 0 : index
    %c0_0 = arith.constant 0 : index
    %0 = vector.load %arg1[%c0, %c0_0] : memref<16x32xf32, #tpu.memory_space<vmem>>, vector<16x32xf32>
    %c0_1 = arith.constant 0 : index
    %c0_2 = arith.constant 0 : index
    %1 = vector.load %arg2[%c0_1, %c0_2] : memref<32x16xf32, #tpu.memory_space<vmem>>, vector<32x16xf32>
    %cst = arith.constant dense<0.000000e+00> : vector<16x16xf32>
    %2 = tpu.matmul %0, %1, %cst {dimension_numbers = #tpu.dot_dimension_numbers<[1], [0], [0], [1], [0, 0, 1, 1], [], []>} : vector<16x32xf32>, vector<32x16xf32>, vector<16x16xf32> -> vector<16x16xf32>
    %c0_3 = arith.constant 0 : index
    %c0_4 = arith.constant 0 : index
    %3 = vector.load %arg3[%c0_3, %c0_4] : memref<64x16xf32, #tpu.memory_space<vmem>>, vector<64x16xf32>
    %cst_5 = arith.constant dense<0.000000e+00> : vector<64x16xf32>
    %4 = tpu.matmul %3, %2, %cst_5 {dimension_numbers = #tpu.dot_dimension_numbers<[1], [0], [0], [1], [0, 0, 1, 1], [], []>} : vector<64x16xf32>, vector<16x16xf32>, vector<64x16xf32> -> vector<64x16xf32>
    %c0_6 = arith.constant 0 : index
    %c0_7 = arith.constant 0 : index
    %5 = vector.load %arg4[%c0_6, %c0_7] : memref<64x16xf32, #tpu.memory_space<vmem>>, vector<64x16xf32>
    %6 = arith.addf %4, %5 : vector<64x16xf32>
    %cst_8 = arith.constant 5.000000e-01 : f32
    %7 = vector.broadcast %cst_8 : f32 to vector<64x16xf32>
    %8 = arith.mulf %7, %6 : vector<64x16xf32>
    %cst_9 = arith.constant 0.707106769 : f32
    %9 = vector.broadcast %cst_9 : f32 to vector<64x16xf32>
    %10 = arith.mulf %6, %9 : vector<64x16xf32>
    %11 = math.erf %10 : vector<64x16xf32>
    %cst_10 = arith.constant 1.000000e+00 : f32
    %12 = vector.broadcast %cst_10 : f32 to vector<64x16xf32>
    %13 = arith.addf %12, %11 : vector<64x16xf32>
    %14 = arith.mulf %8, %13 : vector<64x16xf32>
    %c0_11 = arith.constant 0 : index
    %c0_12 = arith.constant 0 : index
    %15 = vector.load %arg5[%c0_11, %c0_12] : memref<16x128xf32, #tpu.memory_space<vmem>>, vector<16x128xf32>
    %cst_13 = arith.constant dense<0.000000e+00> : vector<64x128xf32>
    %16 = tpu.matmul %14, %15, %cst_13 {dimension_numbers = #tpu.dot_dimension_numbers<[1], [0], [0], [1], [0, 0, 1, 1], [], []>} : vector<64x16xf32>, vector<16x128xf32>, vector<64x128xf32> -> vector<64x128xf32>
    %c0_14 = arith.constant 0 : index
    %c0_15 = arith.constant 0 : index
    %17 = vector.load %arg6[%c0_14, %c0_15] : memref<1x128xf32, #tpu.memory_space<vmem>>, vector<1x128xf32>
    %18 = vector.broadcast %17 : vector<1x128xf32> to vector<64x128xf32>
    %19 = arith.addf %16, %18 : vector<64x128xf32>
    %c0_16 = arith.constant 0 : index
    %c0_17 = arith.constant 0 : index
    %20 = vector.load %arg7[%c0_16, %c0_17] : memref<64x128xf32, #tpu.memory_space<vmem>>, vector<64x128xf32>
    tpu.vector_store %arg7[%c0_16, %c0_17], %19 {strides = array<i32>} : memref<64x128xf32, #tpu.memory_space<vmem>>, vector<64x128xf32>,
    return
  }
  func.func @transform_0(%arg0: i32) -> (i32, i32) {
    %c0_i32 = arith.constant 0 : i32
    %c0_i32_0 = arith.constant 0 : i32
    %c0_i32_1 = arith.constant 0 : i32
    return %c0_i32, %c0_i32_0 : i32, i32
  }
  func.func @transform_1(%arg0: i32) -> (i32, i32) {
    %c0_i32 = arith.constant 0 : i32
    %c0_i32_0 = arith.constant 0 : i32
    %c0_i32_1 = arith.constant 0 : i32
    return %c0_i32, %c0_i32_0 : i32, i32
  }
  func.func @transform_2(%arg0: i32) -> (i32, i32) {
    %c0_i32 = arith.constant 0 : i32
    %c0_i32_0 = arith.constant 0 : i32
    %c0_i32_1 = arith.constant 0 : i32
    return %c0_i32, %c0_i32_0 : i32, i32
  }
  func.func @transform_3(%arg0: i32) -> (i32, i32) {
    %c0_i32 = arith.constant 0 : i32
    %c0_i32_0 = arith.constant 0 : i32
    %c0_i32_1 = arith.constant 0 : i32
    return %c0_i32, %c0_i32_0 : i32, i32
  }
  func.func @transform_4(%arg0: i32) -> (i32, i32) {
    %c0_i32 = arith.constant 0 : i32
    %c0_i32_0 = arith.constant 0 : i32
    %c0_i32_1 = arith.constant 0 : i32
    return %c0_i32, %c0_i32_0 : i32, i32
  }
  func.func @transform_5(%arg0: i32) -> (i32, i32) {
    %c0_i32 = arith.constant 0 : i32
    %c0_i32_0 = arith.constant 0 : i32
    %c0_i32_1 = arith.constant 0 : i32
    return %c0_i32, %c0_i32_0 : i32, i32
  }
  func.func @transform_6(%arg0: i32) -> (i32, i32) {
    %c0_i32 = arith.constant 0 : i32
    %c0_i32_0 = arith.constant 0 : i32
    %c0_i32_1 = arith.constant 0 : i32
    return %c0_i32, %c0_i32_0 : i32, i32
  }
}

</mosaic_0001>

<bundles_post_ra>
// kernel: tpu_custom_call.1
= control target key start
LH: loop header
LB: loop body
LE: loop exit
PB: predicated region body
PF: predicated region fallthrough
CT: control target
= control target key end

     0   :  { %vm30_vm0 = vcmask 261120   ;;  %s725_s0 = inlined_call_operand.vmem [shape: f32[16,32], index: 0, kind: input, shape index: {}]   ;;  %s726_s1 = inlined_call_operand.vmem [shape: f32[32,16], index: 1, kind: input, shape index: {}]   ;;  %s727_s2 = inlined_call_operand.vmem [shape: f32[64,16], index: 2, kind: input, shape index: {}]   ;;  %s728_s3 = inlined_call_operand.vmem [shape: f32[64,16], index: 3, kind: input, shape index: {}]   ;;  %s729_s4 = inlined_call_operand.vmem [shape: f32[16,128], index: 4, kind: input, shape index: {}]   ;;  %s730_s5 = inlined_call_operand.vmem [shape: f32[1,128], index: 5, kind: input, shape index: {}]   ;;  %s731_s6 = inlined_call_operand.hbm [shape: f32[64,128], index: 6, kind: output, shape index: {}]  }
   0x1   :  { %v29_v0 = vld [vmem:[%s726_s1 + $0x18] sm:$0xff]  ;;  %v28_v1 = vld [vmem:[%s726_s1 + $0x10] sm:$0xff]  ;;  %v24_v2 = vld [vmem:[%s725_s0] sm:$0xff] }
   0x2   :  { %505 = vmatprep.subr.mxu0 %v29_v0  ;;  %v27_v3 = vld [vmem:[%s726_s1 + $0x8] sm:$0xff]  ;;  %513 = vmatprep.mubr.msk.f32.mxu0 %vm30_vm0, %v24_v2 }
   0x3   :  { %506 = vmatpush3.msra.mxu0 %v29_v0 }
   0x4   :  { %11 = vsyncpa [#allocation3], 0  ;;  %507 = vmatprep.subr.mxu0 %v28_v1  ;;  %v26_v4 = vld [vmem:[%s726_s1] sm:$0xff]  ;;  %v25_v5 = vld [vmem:[%s725_s0 + $0x8] sm:$0xff]  ;;  %vm128_vm1 = vcmask 130048   ;;  %s593_s16 = smov [#allocation2]  }
   0x5   :  { %508 = vmatpush3.msra.mxu0 %v28_v1  ;;  %v112_v6 = vld [vmem:[%s727_s2] sm:$0xff]  ;;  %v113_v9 = vld [vmem:[%s727_s2 + $0x8] sm:$0xff]  ;;  %v114_v10 = vld [vmem:[%s727_s2 + $0x10] sm:$0xff]  ;;  %s449_s17 = sshll.u32 %s593_s16, 4  ;;  %s450_s17 = int_to_ptr.vmem [resolvable:$true] %s449_s17 }
   0x6   :  { %509 = vmatprep.subr.mxu0 %v27_v3  ;;  %520 = vmatprep.mubr.msk.f32.mxu1 %vm128_vm1, %v112_v6  ;;  %v115_v11 = vld [vmem:[%s727_s2 + $0x18] sm:$0xff]  ;;  %v116_v12 = vld [vmem:[%s727_s2 + $0x20] sm:$0xff]  ;;  %v117_v13 = vld [vmem:[%s727_s2 + $0x28] sm:$0xff]  ;;  %p576_p1 = scmp.lt.s32.totalorder %s450_s17, %s450_s17 }
   0x7   :  { %510 = vmatpush3.msra.mxu0 %v27_v3  ;;  %v118_v14 = vld [vmem:[%s727_s2 + $0x30] sm:$0xff]  ;;  %v119_v15 = vld [vmem:[%s727_s2 + $0x38] sm:$0xff]  ;;  %v299_v16 = vld [vmem:[%s729_s4 + $0x8] sm:$0xff] }
   0x8   :  { %511 = vmatprep.subr.mxu0 %v26_v4  ;;  %v298_v17 = vld [vmem:[%s729_s4] sm:$0xff]  ;;  %v121_v18 = vld [vmem:[%s728_s3 + $0x8] sm:$0xff]  ;;  %v123_v23 = vld [vmem:[%s728_s3 + $0x18] sm:$0xff] }
   0x9   :  { %512 = vmatpush3.msra.mxu0 %v26_v4  ;;  %v120_v20 = vld [vmem:[%s728_s3] sm:$0xff]  ;;  %v122_v27 = vld [vmem:[%s728_s3 + $0x10] sm:$0xff]  ;;  %v125_v31 = vld [vmem:[%s728_s3 + $0x28] sm:$0xff] }
   0xa   :  { %514 = vmatmul.mubr.msk.f32.vlgmr.msra.gmra.mxu0 %vm30_vm0, %v25_v5  ;;  %532 = vmatprep.subr.mxu0 %v299_v16  ;;  %v124_v35 = vld [vmem:[%s728_s3 + $0x20] sm:$0xff]  ;;  %v127_v39 = vld [vmem:[%s728_s3 + $0x38] sm:$0xff]  ;;  %v126_v43 = vld [vmem:[%s728_s3 + $0x30] sm:$0xff] }
   0xb   :  { %533 = vmatpush3.msra.mxu0 %v299_v16 }
   0xc   :  { %534 = vmatprep.subr.mxu0 %v298_v17 }
   0xd   :  { %535 = vmatpush3.msra.mxu0 %v298_v17 }
  0xca   :  { %v515_v7 = vpop.f32.mrf.mxu0 }
  0xcb   :  { %516 = vmatprep.subr.mxu1 %v515_v7 }
  0xcc   :  { %v103_v8 = vpop.f32.mrf.mxu0  ;;  %517 = vmatpush3.msra.mxu1 %v515_v7 }
  0xcd   :  { %518 = vmatprep.subr.mxu1 %v103_v8 }
  0xce   :  { %519 = vmatpush3.msra.mxu1 %v103_v8 }
  0xcf   :  { %521 = vmatmul.mubr.msk.f32.vlgmr.msra.gmra.mxu1 %vm128_vm1, %v113_v9  ;;  %548 = vmatprep.subr.mxu1 %v299_v16 }
  0xd0   :  { %523 = vmatprep.mubr.msk.f32.mxu1 %vm128_vm1, %v114_v10  ;;  %550 = vmatpush3.msra.mxu1 %v299_v16 }
  0xd1   :  { %549 = vmatprep.subr.mxu1 %v298_v17 }
  0xd2   :  { %551 = vmatpush3.msra.mxu1 %v298_v17 }
  0xd3   :  { %524 = vmatmul.mubr.msk.f32.gmra.mxu1 %vm128_vm1, %v115_v11 }
  0xd4   :  { %526 = vmatprep.mubr.msk.f32.mxu1 %vm128_vm1, %v116_v12 }
  0xd7   :  { %527 = vmatmul.mubr.msk.f32.gmra.mxu1 %vm128_vm1, %v117_v13 }
  0xd8   :  { %529 = vmatprep.mubr.msk.f32.mxu1 %vm128_vm1, %v118_v14 }
  0xdb   :  { %530 = vmatmul.mubr.msk.f32.gmra.mxu1 %vm128_vm1, %v119_v15 }
 0x18f   :  { %v522_v19 = vpop.f32.mrf.mxu1 }
 0x190   :  { %v225_v21 = vadd.f32 %v522_v19, %v121_v18  ;;  %v470_v18 = vld [vmem:[%s730_s5] ss:$0 sm:$0xff]  ;;  %s571_s5 = scalar_lea.vmem %s450_s17, 1024 }
 0x191   :  { %v219_v22 = vpop.f32.mrf.mxu1  ;;  %p572_p0 = scmp.ne.s32.totalorder %s450_s17, %s571_s5  ;;  %p577_p2 = scmp.lt.s32.totalorder %s571_s5, %s571_s5 }
 0x192   :  { %v267_v24 = vmul.f32 0.70710677, %v225_v21  ;;  %v220_v25 = vadd.f32 %v219_v22, %v120_v20  ;;  %v259_v56 = vmul.f32 0.5, %v225_v21 }
 0x193   :  { %v525_v26 = vpop.f32.mrf.mxu1  ;;  %p578_p3 = por %p577_p2, %p576_p1 }
 0x194   :  { %555 = verf.f32 %v267_v24  ;;  %v266_v28 = vmul.f32 0.70710677, %v220_v25  ;;  %v235_v29 = vadd.f32 %v525_v26, %v123_v23  ;;  %v258_v53 = vmul.f32 0.5, %v220_v25 }
 0x195   :  { %v229_v30 = vpop.f32.mrf.mxu1  ;;  %p579_p4 = pnand %p578_p3, %p572_p0 }
 0x196   :  { %557 = verf.f32 %v266_v28  ;;  %v269_v32 = vmul.f32 0.70710677, %v235_v29  ;;  %v230_v33 = vadd.f32 %v229_v30, %v122_v27  ;;  %v261_v0 = vmul.f32 0.5, %v235_v29 }
 0x197   :  { %v528_v34 = vpop.f32.mrf.mxu1 }
 0x198   :  { %559 = verf.f32 %v269_v32  ;;  %v268_v36 = vmul.f32 0.70710677, %v230_v33  ;;  %v245_v37 = vadd.f32 %v528_v34, %v125_v31  ;;  %v260_v61 = vmul.f32 0.5, %v230_v33 }
 0x199   :  { %v239_v38 = vpop.f32.mrf.mxu1 }
 0x19a   :  { %561 = verf.f32 %v268_v36  ;;  %v271_v40 = vmul.f32 0.70710677, %v245_v37  ;;  %v240_v41 = vadd.f32 %v239_v38, %v124_v35  ;;  %v263_v8 = vmul.f32 0.5, %v245_v37 }
 0x19b   :  { %v531_v42 = vpop.f32.mrf.mxu1 }
 0x19c   :  { %563 = verf.f32 %v271_v40  ;;  %v270_v44 = vmul.f32 0.70710677, %v240_v41  ;;  %v255_v45 = vadd.f32 %v531_v42, %v127_v39  ;;  %v262_v5 = vmul.f32 0.5, %v240_v41 }
 0x19d   :  { %v249_v46 = vpop.f32.mrf.mxu1 }
 0x19e   :  { %565 = verf.f32 %v270_v44  ;;  %v273_v47 = vmul.f32 0.70710677, %v255_v45  ;;  %v250_v48 = vadd.f32 %v249_v46, %v126_v43  ;;  %v265_v15 = vmul.f32 0.5, %v255_v45 }
 0x1a0   :  { %567 = verf.f32 %v273_v47  ;;  %v272_v49 = vmul.f32 0.70710677, %v250_v48  ;;  %v264_v13 = vmul.f32 0.5, %v250_v48 }
 0x1a1   :  { %v556_v50 = vpop.eup %555 }
 0x1a2   :  { %569 = verf.f32 %v272_v49  ;;  %v283_v52 = vadd.f32 1.0, %v556_v50 }
 0x1a3   :  { %v558_v51 = vpop.eup %557 }
 0x1a4   :  { %v282_v54 = vadd.f32 1.0, %v558_v51  ;;  %v291_v59 = vmul.f32 %v283_v52, %v259_v56 }
 0x1a5   :  { %v560_v55 = vpop.eup %559 }
 0x1a6   :  { %v290_v57 = vmul.f32 %v282_v54, %v258_v53  ;;  %v285_v60 = vadd.f32 1.0, %v560_v55 }
 0x1a7   :  { %v562_v58 = vpop.eup %561 }
 0x1a8   :  { %v284_v62 = vadd.f32 1.0, %v562_v58  ;;  %536 = vmatprep.mubr.msk.f32.mxu0 %vm128_vm1, %v290_v57  ;;  %v293_v3 = vmul.f32 %v285_v60, %v261_v0 }
 0x1a9   :  { %v564_v63 = vpop.eup %563  ;;  %537 = vmatmul.mubr.msk.f32.vlgmr.msra.gmra.mxu0 %vm128_vm1, %v291_v59 }
 0x1aa   :  { %v292_v1 = vmul.f32 %v284_v62, %v260_v61  ;;  %v287_v4 = vadd.f32 1.0, %v564_v63 }
 0x1ab   :  { %v566_v2 = vpop.eup %565 }
 0x1ac   :  { %v286_v6 = vadd.f32 1.0, %v566_v2  ;;  %539 = vmatprep.mubr.msk.f32.mxu0 %vm128_vm1, %v292_v1  ;;  %v295_v11 = vmul.f32 %v287_v4, %v263_v8 }
 0x1ad   :  { %v568_v7 = vpop.eup %567  ;;  %540 = vmatmul.mubr.msk.f32.gmra.mxu0 %vm128_vm1, %v293_v3 }
 0x1ae   :  { %v294_v9 = vmul.f32 %v286_v6, %v262_v5  ;;  %v289_v12 = vadd.f32 1.0, %v568_v7 }
 0x1af   :  { %v570_v10 = vpop.eup %569 }
 0x1b0   :  { %v288_v14 = vadd.f32 1.0, %v570_v10  ;;  %542 = vmatprep.mubr.msk.f32.mxu0 %vm128_vm1, %v294_v9  ;;  %v297_v17 = vmul.f32 %v289_v12, %v265_v15 }
 0x1b1   :  { %543 = vmatmul.mubr.msk.f32.gmra.mxu0 %vm128_vm1, %v295_v11 }
 0x1b2   :  { %v296_v16 = vmul.f32 %v288_v14, %v264_v13 }
 0x1b4   :  { %545 = vmatprep.mubr.msk.f32.mxu1 %vm128_vm1, %v296_v16 }
 0x1b5   :  { %546 = vmatmul.mubr.msk.f32.vlgmr.msra.gmra.mxu1 %vm128_vm1, %v297_v17 }
 0x269   :  { %v538_v19 = vpop.f32.mrf.mxu0 }
 0x26a   :  { %v403_v20 = vadd.f32 %v538_v19, %v470_v18 }
 0x26b   :  { %v397_v21 = vpop.f32.mrf.mxu0 }
 0x26c   :  { %437 = vst [vmem:[#allocation2 + $0x8] sm:$0xff] %v403_v20  ;;  %v398_v22 = vadd.f32 %v470_v18, %v397_v21 }
 0x26d   :  { %v541_v23 = vpop.f32.mrf.mxu0 }
 0x26e   :  { %436 = vst [vmem:[#allocation2] sm:$0xff] %v398_v22  ;;  %v413_v24 = vadd.f32 %v541_v23, %v470_v18 }
 0x26f   :  { %v407_v25 = vpop.f32.mrf.mxu0 }
 0x270   :  { %439 = vst [vmem:[#allocation2 + $0x18] sm:$0xff] %v413_v24  ;;  %v408_v26 = vadd.f32 %v470_v18, %v407_v25 }
 0x271   :  { %v544_v27 = vpop.f32.mrf.mxu0 }
 0x272   :  { %438 = vst [vmem:[#allocation2 + $0x10] sm:$0xff] %v408_v26  ;;  %v423_v28 = vadd.f32 %v544_v27, %v470_v18 }
 0x273   :  { %v417_v29 = vpop.f32.mrf.mxu0 }
 0x274   :  { %441 = vst [vmem:[#allocation2 + $0x28] sm:$0xff] %v423_v28  ;;  %v418_v30 = vadd.f32 %v470_v18, %v417_v29 }
 0x275   :  { %v547_v31 = vpop.f32.mrf.mxu1 }
 0x276   :  { %440 = vst [vmem:[#allocation2 + $0x20] sm:$0xff] %v418_v30  ;;  %v433_v32 = vadd.f32 %v547_v31, %v470_v18 }
 0x277   :  { %v427_v33 = vpop.f32.mrf.mxu1 }
 0x278   :  { %443 = vst [vmem:[#allocation2 + $0x38] sm:$0xff] %v433_v32  ;;  %v428_v34 = vadd.f32 %v470_v18, %v427_v33 }
 0x27a   :  { %442 = vst [vmem:[#allocation2 + $0x30] sm:$0xff] %v428_v34 }
 0x27b   :  { %582 = shalt.err (!%p579_p4)
}
 0x27c   :  { %s594_s18 = smov 128   ;;  %s595_s19 = smov 8  }
 0x27d   :  { %455 = dma.vmem_to_hbm [thread:$0]  %s450_s17, 1024, %s731_s6, [#allocation3], %s594_s18, %s594_s18, %s595_s19  }
 0x27e   :  { %591 = dma.done.wait [#allocation3], 1024  }
 0x27f   :  { %592 = vsyncadd [#allocation3], 4294966272 }
 0x280   :  { %459 = vsyncpa [#allocation3], 1 }

</bundles_post_ra>
